<compile_context>
chip_gen: v6e
topology: v6e:2x2x1
jax: 0.10.0
libtpu: 0.0.40
codegen_flags: <defaults>
</compile_context>

<pallas_src>
import functools

import jax
import jax.numpy as jnp
from jax import lax
from jax.experimental import pallas as pl
from jax.experimental.pallas import tpu as pltpu


_LANE_W = 512   # lane-dense trailing dim (multiple of 128)
_SUB = 16       # accumulator rows (multiple of 8); 16 halves the group count


def _kl_partial_kernel(mu_ref, lv_ref, out_ref, *, sub, n_groups):
    """Fold one (tile_r, W) block of exp(lv) + mu^2 - lv into the resident
    (sub, W) f32 output block.  The 0.5 scale, the per-element -1, and the
    zero-padding correction are all applied once in the wrapper."""
    i = pl.program_id(1)

    @pl.when(i == 0)
    def _():
        out_ref[...] = jnp.zeros_like(out_ref)

    def body(g, acc):
        lo = pl.multiple_of(g * sub, sub)
        mu = mu_ref[pl.ds(lo, sub), :].astype(jnp.float32)
        lv = lv_ref[pl.ds(lo, sub), :].astype(jnp.float32)
        # Elementwise only: VPU (+, *) and one EUP exp; no cross-lane work.
        return acc + (jnp.exp(lv) + mu * mu - lv)

    out_ref[...] = lax.fori_loop(
        0, n_groups, body, out_ref[...], unroll=min(4, n_groups)
    )


def _round_up(x, m):
    return (x + m - 1) // m * m


def kl_loss(mu, log_var, *, target_block_bytes=1 << 20, num_partitions=None):
    """Pallas TPU equivalent of
    torch.mean(0.5 * (log_var.exp() + mu**2 - log_var - 1).sum(dim=1))."""
    assert mu.shape == log_var.shape, (mu.shape, log_var.shape)
    assert mu.ndim >= 2
    n = mu.size
    # mean of the dim-1 sums == global sum / (numel / shape[1])
    mean_divisor = n // mu.shape[1]

    lane_w = _LANE_W
    sub = _SUB

    # ---- how many TensorCores can independently stream HBM? (v7x: 2) ----
    is_v7 = False
    try:
        is_v7 = "v7" in jax.devices()[0].device_kind.lower()
    except Exception:
        pass
    if num_partitions is None:
        num_partitions = 2 if is_v7 else 1   # single-TC chips: no pointless split

    # ---- tile sizing: ~target_block_bytes per input block, rows % sub == 0 ----
    rows_needed = pl.cdiv(n, lane_w)
    target_rows = target_block_bytes // (lane_w * 4)
    target_rows = max(sub, min(512, (target_rows // sub) * sub))
    tile_r = min(target_rows, _round_up(rows_needed, sub))

    parts = num_partitions if (
        num_partitions > 1 and pl.cdiv(rows_needed, tile_r) >= num_partitions
    ) else 1

    # ---- zero-pad to a whole number of (parts * tile_r, lane_w) slabs ----
    total_rows = _round_up(rows_needed, parts * tile_r)
    n_total = total_rows * lane_w
    mu_flat = mu.reshape(-1)
    lv_flat = log_var.reshape(-1)
    pad = n_total - n
    if pad:
        mu_flat = jnp.pad(mu_flat, (0, pad))
        lv_flat = jnp.pad(lv_flat, (0, pad))
    mu2 = mu_flat.reshape(total_rows, lane_w)
    lv2 = lv_flat.reshape(total_rows, lane_w)

    inner = total_rows // (parts * tile_r)
    n_groups = tile_r // sub

    if parts > 1:
        if is_v7 and hasattr(pltpu, "CORE_PARALLEL"):
            part_sem = pltpu.CORE_PARALLEL      # real 2-TC split on v7x
        else:
            part_sem = "parallel"               # megacore sharding elsewhere
    else:
        part_sem = "arbitrary"

    def in_map(pi, ii):
        return (pi * inner + ii, 0)

    itemsize = jnp.dtype(mu.dtype).itemsize
    cost = pl.CostEstimate(
        flops=4 * n_total,
        transcendentals=n_total,
        bytes_accessed=2 * n_total * itemsize + parts * sub * lane_w * 4,
    )

    partials = pl.pallas_call(
        functools.partial(_kl_partial_kernel, sub=sub, n_groups=n_groups),
        out_shape=jax.ShapeDtypeStruct((parts, sub, lane_w), jnp.float32),
        grid_spec=pltpu.PrefetchScalarGridSpec(
            num_scalar_prefetch=0,
            grid=(parts, inner),
            in_specs=[
                pl.BlockSpec((tile_r, lane_w), in_map),
                pl.BlockSpec((tile_r, lane_w), in_map),
            ],
            # Constant block index across the inner axis -> output stays
            # VMEM-resident and doubles as the accumulator (no scratch).
            out_specs=pl.BlockSpec((None, sub, lane_w), lambda pi, ii: (pi, 0, 0)),
        ),
        compiler_params=pltpu.CompilerParams(
            dimension_semantics=(part_sem, "arbitrary"),
        ),
        cost_estimate=cost,
    )(mu2, lv2)

    # One tiny cross-lane reduce outside the hot loop.  Subtracting n_total
    # applies both the hoisted per-element "-1" and the zero-pad correction
    # (each padded zero contributed exactly 1 to the sum).
    total = jnp.sum(partials)
    return 0.5 * (total - jnp.float32(n_total)) / jnp.float32(mean_divisor)


def kl_loss_ref(mu, log_var):
    mu = mu.astype(jnp.float32)
    log_var = log_var.astype(jnp.float32)
    return jnp.mean(
        0.5 * jnp.sum(jnp.exp(log_var) + jnp.square(mu) - log_var - 1.0, axis=1)
    )


if __name__ == "__main__":
    root = jax.random.PRNGKey(0)

    def make_inputs(b, d, dtype, salt):
        k1, k2 = jax.random.split(jax.random.fold_in(root, salt))
        mu = jax.random.normal(k1, (b, d), dtype=jnp.float32).astype(dtype)
        log_var = (0.1 * jax.random.normal(k2, (b, d), dtype=jnp.float32)).astype(dtype)
        return mu, log_var

    cases = [
        # (B, D, dtype, kl_loss kwargs)
        (2, 32, jnp.float32, {}),                                      # tiny VAE latent
        (128, 128, jnp.float32, dict(target_block_bytes=16 * 1024)),   # multi-step inner grid
        (256, 256, jnp.float32, dict(target_block_bytes=64 * 1024,
                                     num_partitions=2)),               # partitioned outer grid
        (64, 96, jnp.bfloat16, {}),                                    # bf16 stays bf16 in HBM
        (6, 20, jnp.float32, {}),                                      # odd shape -> zero-pad path
    ]
    for salt, (b, d, dtype, kw) in enumerate(cases):
        mu, log_var = make_inputs(b, d, dtype, salt)
        out = jax.block_until_ready(kl_loss(mu, log_var, **kw))
        ref = kl_loss_ref(mu, log_var)
        assert jnp.allclose(out, ref, rtol=1e-4, atol=1e-4), (
            b, d, dtype, float(out), float(ref))
    print("KERNEL_OK")
</pallas_src>

<mosaic_0001>
module attributes {stable_mosaic.version = 11 : i64} {
  func.func @_kl_partial_kernel(%arg0: i32, %arg1: i32, %arg2: memref<16x512xf32, #tpu.memory_space<vmem>>, %arg3: memref<16x512xf32, #tpu.memory_space<vmem>>, %arg4: memref<1x16x512xf32, #tpu.memory_space<vmem>>) attributes {dimension_semantics = [#tpu.dimension_semantics<arbitrary>, #tpu.dimension_semantics<arbitrary>], iteration_bounds = array<i64: 1, 1>, scalar_prefetch = 0 : i64, scratch_operands = 0 : i64, tpu.core_type = #tpu.core_type<tc>, window_params = [{transform_indices = @transform_0, window_bounds = array<i64: 16, 512>}, {transform_indices = @transform_1, window_bounds = array<i64: 16, 512>}, {transform_indices = @transform_2, window_bounds = array<i64: 1, 16, 512>}]} {
    %c0_i32 = arith.constant 0 : i32
    %0 = arith.cmpi eq, %arg1, %c0_i32 : i32
    %1 = arith.extui %0 : i1 to i32
    %c0_i32_0 = arith.constant 0 : i32
    %2 = arith.cmpi ne, %1, %c0_i32_0 : i32
    scf.if %2 {
      %cst = arith.constant 0.000000e+00 : f32
      %19 = vector.broadcast %cst : f32 to vector<16x512xf32>
      %c0_9 = arith.constant 0 : index
      %c0_10 = arith.constant 0 : index
      %c0_11 = arith.constant 0 : index
      %20 = vector.load %arg4[%c0_9, %c0_10, %c0_11] : memref<1x16x512xf32, #tpu.memory_space<vmem>>, vector<1x16x512xf32>
      %21 = vector.shape_cast %20 : vector<1x16x512xf32> to vector<16x512xf32>
      %22 = vector.shape_cast %19 : vector<16x512xf32> to vector<1x16x512xf32>
      tpu.vector_store %arg4[%c0_9, %c0_10, %c0_11], %22 {strides = array<i32>} : memref<1x16x512xf32, #tpu.memory_space<vmem>>, vector<1x16x512xf32>,
    } else {
    }
    %c0 = arith.constant 0 : index
    %c0_1 = arith.constant 0 : index
    %c0_2 = arith.constant 0 : index
    %3 = vector.load %arg4[%c0, %c0_1, %c0_2] : memref<1x16x512xf32, #tpu.memory_space<vmem>>, vector<1x16x512xf32>
    %4 = vector.shape_cast %3 : vector<1x16x512xf32> to vector<16x512xf32>
    %c0_i32_3 = arith.constant 0 : i32
    %c16_i32 = arith.constant 16 : i32
    %5 = arith.muli %c0_i32_3, %c16_i32 : i32
    %6 = tpu.assume_multiple %5, 16 : i32
    %7 = arith.index_cast %6 : i32 to index
    %c0_4 = arith.constant 0 : index
    %8 = vector.load %arg2[%7, %c0_4] : memref<16x512xf32, #tpu.memory_space<vmem>>, vector<16x512xf32>
    %9 = arith.index_cast %6 : i32 to index
    %c0_5 = arith.constant 0 : index
    %10 = vector.load %arg3[%9, %c0_5] : memref<16x512xf32, #tpu.memory_space<vmem>>, vector<16x512xf32>
    %11 = math.exp %10 : vector<16x512xf32>
    %12 = arith.mulf %8, %8 : vector<16x512xf32>
    %13 = arith.addf %11, %12 : vector<16x512xf32>
    %14 = arith.subf %13, %10 : vector<16x512xf32>
    %15 = arith.addf %4, %14 : vector<16x512xf32>
    %c1_i32 = arith.constant 1 : i32
    %c0_6 = arith.constant 0 : index
    %c0_7 = arith.constant 0 : index
    %c0_8 = arith.constant 0 : index
    %16 = vector.load %arg4[%c0_6, %c0_7, %c0_8] : memref<1x16x512xf32, #tpu.memory_space<vmem>>, vector<1x16x512xf32>
    %17 = vector.shape_cast %16 : vector<1x16x512xf32> to vector<16x512xf32>
    %18 = vector.shape_cast %15 : vector<16x512xf32> to vector<1x16x512xf32>
    tpu.vector_store %arg4[%c0_6, %c0_7, %c0_8], %18 {strides = array<i32>} : memref<1x16x512xf32, #tpu.memory_space<vmem>>, vector<1x16x512xf32>,
    return
  }
  func.func @transform_0(%arg0: i32, %arg1: i32) -> (i32, i32) {
    %c1_i32 = arith.constant 1 : i32
    %0 = arith.muli %arg0, %c1_i32 : i32
    %1 = arith.addi %0, %arg1 : i32
    %c0_i32 = arith.constant 0 : i32
    %c0_i32_0 = arith.constant 0 : i32
    return %1, %c0_i32 : i32, i32
  }
  func.func @transform_1(%arg0: i32, %arg1: i32) -> (i32, i32) {
    %c1_i32 = arith.constant 1 : i32
    %0 = arith.muli %arg0, %c1_i32 : i32
    %1 = arith.addi %0, %arg1 : i32
    %c0_i32 = arith.constant 0 : i32
    %c0_i32_0 = arith.constant 0 : i32
    return %1, %c0_i32 : i32, i32
  }
  func.func @transform_2(%arg0: i32, %arg1: i32) -> (i32, i32, i32) {
    %c0_i32 = arith.constant 0 : i32
    %c0_i32_0 = arith.constant 0 : i32
    %c0_i32_1 = arith.constant 0 : i32
    return %arg0, %c0_i32, %c0_i32_0 : i32, i32, i32
  }
}

</mosaic_0001>

<bundles_post_ra>
// kernel: tpu_custom_call.1
= control target key start
LH: loop header
LB: loop body
LE: loop exit
PB: predicated region body
PF: predicated region fallthrough
CT: control target
= control target key end

     0   :  { %7 = vsyncpa [#allocation3], 0  ;;  %s295_s0 = inlined_call_operand.hbm [shape: f32[16,512], index: 0, kind: input, shape index: {}]   ;;  %s296_s1 = inlined_call_operand.hbm [shape: f32[16,512], index: 1, kind: input, shape index: {}]   ;;  %s297_s2 = inlined_call_operand.hbm [shape: f32[1,16,512], index: 2, kind: output, shape index: {}]  }
   0x1   :  { %8 = vsyncpa [#allocation6], 0 }
   0x2   :  { %9 = vsyncpa [#allocation4], 0  ;;  %s257_s9 = smov [#allocation2]  }
   0x3   :  { %s20_s10 = sshll.u32 %s257_s9, 4  ;;  %s21_s10 = int_to_ptr.vmem [resolvable:$true] %s20_s10 }
   0x4   :  { %s199_s11 = scalar_lea.vmem %s21_s10, 1024  ;;  %p204_p1 = scmp.lt.s32.totalorder %s21_s10, %s21_s10 }
   0x5   :  { %p200_p0 = scmp.ne.s32.totalorder %s21_s10, %s199_s11  ;;  %p205_p2 = scmp.lt.s32.totalorder %s199_s11, %s199_s11 }
   0x7   :  { %p206_p3 = por %p205_p2, %p204_p1 }
   0x9   :  { %p207_p4 = pnand %p206_p3, %p200_p0 }
   0xb   :  { %210 = shalt.err (!%p207_p4)
}
   0xc   :  { %s258_s12 = smov 512   ;;  %s259_s13 = smov 32  }
   0xd   :  { %26 = dma.hbm_to_vmem [thread:$0]  %s295_s0, 1024, %s21_s10, [#allocation3], %s258_s12, %s258_s12, %s259_s13  }
   0xe   :  { %s260_s16 = smov [#allocation5]  }
   0xf   :  { %s37_s17 = sshll.u32 %s260_s16, 4  ;;  %s38_s17 = int_to_ptr.vmem [resolvable:$true] %s37_s17 }
  0x10   :  { %s219_s18 = scalar_lea.vmem %s38_s17, 1024  ;;  %p224_p6 = scmp.lt.s32.totalorder %s38_s17, %s38_s17 }
  0x11   :  { %p220_p5 = scmp.ne.s32.totalorder %s38_s17, %s219_s18  ;;  %p225_p7 = scmp.lt.s32.totalorder %s219_s18, %s219_s18 }
  0x13   :  { %p226_p8 = por %p225_p7, %p224_p6 }
  0x15   :  { %p227_p9 = pnand %p226_p8, %p220_p5 }
  0x17   :  { %230 = shalt.err (!%p227_p9)
}
  0x18   :  { %43 = dma.hbm_to_vmem [thread:$0]  %s296_s1, 1024, %s38_s17, [#allocation6], %s258_s12, %s258_s12, %s259_s13  }
  0x19   :  { %251 = dma.done.wait [#allocation3], 1024  }
  0x1a   :  { %252 = vsyncadd [#allocation3], 4294966272 }
  0x1b   :  { %253 = dma.done.wait [#allocation6], 1024  }
  0x1c   :  { %254 = vsyncadd [#allocation6], 4294966272  ;;  %v87_v0 = vld [vmem:[#allocation5] sm:$0xff]  ;;  %v88_v2 = vld [vmem:[#allocation5 + $0x8] sm:$0xff]  ;;  %s261_s0 = smov [#allocation7]  }
  0x1d   :  { %v95_v1 = vmul.f32 1.442695, %v87_v0  ;;  %v89_v3 = vld [vmem:[#allocation5 + $0x10] sm:$0xff]  ;;  %v97_v4 = vmul.f32 1.442695, %v88_v2  ;;  %v90_v6 = vld [vmem:[#allocation5 + $0x18] sm:$0xff] }
  0x1e   :  { %v99_v5 = vmul.f32 1.442695, %v89_v3  ;;  %v101_v7 = vmul.f32 1.442695, %v90_v6  ;;  %v91_v8 = vld [vmem:[#allocation5 + $0x20] sm:$0xff]  ;;  %v92_v10 = vld [vmem:[#allocation5 + $0x28] sm:$0xff] }
  0x1f   :  { %175 = vpow2.f32 %v95_v1  ;;  %v103_v9 = vmul.f32 1.442695, %v91_v8  ;;  %v93_v11 = vld [vmem:[#allocation5 + $0x30] sm:$0xff]  ;;  %v105_v12 = vmul.f32 1.442695, %v92_v10  ;;  %v94_v14 = vld [vmem:[#allocation5 + $0x38] sm:$0xff] }
  0x20   :  { %177 = vpow2.f32 %v97_v4  ;;  %v107_v13 = vmul.f32 1.442695, %v93_v11  ;;  %v109_v15 = vmul.f32 1.442695, %v94_v14  ;;  %v77_v16 = vld [vmem:[#allocation2] sm:$0xff]  ;;  %v78_v17 = vld [vmem:[#allocation2 + $0x8] sm:$0xff] }
  0x21   :  { %179 = vpow2.f32 %v99_v5  ;;  %v79_v18 = vld [vmem:[#allocation2 + $0x10] sm:$0xff]  ;;  %v111_v19 = vmul.f32 %v77_v16, %v77_v16  ;;  %v80_v20 = vld [vmem:[#allocation2 + $0x18] sm:$0xff]  ;;  %v112_v21 = vmul.f32 %v78_v17, %v78_v17  ;;  %v81_v22 = vld [vmem:[#allocation2 + $0x20] sm:$0xff]  ;;  %s156_s1 = sshll.u32 %s261_s0, 4  ;;  %s157_s1 = int_to_ptr.vmem [resolvable:$true] %s156_s1 }
  0x22   :  { %181 = vpow2.f32 %v101_v7  ;;  %v113_v23 = vmul.f32 %v79_v18, %v79_v18  ;;  %v82_v24 = vld [vmem:[#allocation2 + $0x28] sm:$0xff]  ;;  %v114_v26 = vmul.f32 %v80_v20, %v80_v20  ;;  %v83_v27 = vld [vmem:[#allocation2 + $0x30] sm:$0xff]  ;;  %v115_v30 = vmul.f32 %v81_v22, %v81_v22  ;;  %v84_v31 = vld [vmem:[#allocation2 + $0x38] sm:$0xff]  ;;  %s231_s21 = scalar_lea.vmem %s157_s1, 1024  ;;  %p236_p11 = scmp.lt.s32.totalorder %s157_s1, %s157_s1 }
  0x23   :  { %183 = vpow2.f32 %v103_v9  ;;  %v116_v34 = vmul.f32 %v82_v24, %v82_v24  ;;  %v117_v38 = vmul.f32 %v83_v27, %v83_v27  ;;  %v118_v42 = vmul.f32 %v84_v31, %v84_v31  ;;  %p232_p10 = scmp.ne.s32.totalorder %s157_s1, %s231_s21  ;;  %p237_p12 = scmp.lt.s32.totalorder %s231_s21, %s231_s21 }
  0x24   :  { %185 = vpow2.f32 %v105_v12 }
  0x25   :  { %187 = vpow2.f32 %v107_v13  ;;  %p238_p13 = por %p237_p12, %p236_p11 }
  0x26   :  { %189 = vpow2.f32 %v109_v15 }
  0x27   :  { %p239_p0 = pnand %p238_p13, %p232_p10 }
  0x2c   :  { %v176_v25 = vpop.eup %175 }
  0x2d   :  { %v178_v28 = vpop.eup %177  ;;  %v119_v29 = vadd.f32 %v176_v25, %v111_v19 }
  0x2e   :  { %v180_v32 = vpop.eup %179  ;;  %v120_v33 = vadd.f32 %v178_v28, %v112_v21 }
  0x2f   :  { %v182_v35 = vpop.eup %181  ;;  %v127_v36 = vsub.f32 %v119_v29, %v87_v0  ;;  %v121_v37 = vadd.f32 %v180_v32, %v113_v23 }
  0x30   :  { %v184_v39 = vpop.eup %183  ;;  %v128_v40 = vsub.f32 %v120_v33, %v88_v2  ;;  %v122_v41 = vadd.f32 %v182_v35, %v114_v26 }
  0x31   :  { %v186_v43 = vpop.eup %185  ;;  %v129_v44 = vsub.f32 %v121_v37, %v89_v3  ;;  %v123_v45 = vadd.f32 %v184_v39, %v115_v30  ;;  %143 = vst [vmem:[#allocation7] sm:$0xff] %v127_v36 }
  0x32   :  { %v188_v46 = vpop.eup %187  ;;  %v130_v47 = vsub.f32 %v122_v41, %v90_v6  ;;  %v124_v48 = vadd.f32 %v186_v43, %v116_v34  ;;  %144 = vst [vmem:[#allocation7 + $0x8] sm:$0xff] %v128_v40 }
  0x33   :  { %v190_v49 = vpop.eup %189  ;;  %v131_v50 = vsub.f32 %v123_v45, %v91_v8  ;;  %v125_v51 = vadd.f32 %v188_v46, %v117_v38  ;;  %145 = vst [vmem:[#allocation7 + $0x10] sm:$0xff] %v129_v44 }
  0x34   :  { %v132_v52 = vsub.f32 %v124_v48, %v92_v10  ;;  %v126_v53 = vadd.f32 %v190_v49, %v118_v42  ;;  %146 = vst [vmem:[#allocation7 + $0x18] sm:$0xff] %v130_v47 }
  0x35   :  { %v133_v54 = vsub.f32 %v125_v51, %v93_v11  ;;  %147 = vst [vmem:[#allocation7 + $0x20] sm:$0xff] %v131_v50 }
  0x36   :  { %v134_v55 = vsub.f32 %v126_v53, %v94_v14  ;;  %148 = vst [vmem:[#allocation7 + $0x28] sm:$0xff] %v132_v52 }
  0x37   :  { %149 = vst [vmem:[#allocation7 + $0x30] sm:$0xff] %v133_v54 }
  0x38   :  { %150 = vst [vmem:[#allocation7 + $0x38] sm:$0xff] %v134_v55 }
  0x39   :  { %242 = shalt.err (!%p239_p0)
}
  0x3a   :  { %162 = dma.vmem_to_hbm [thread:$0]  %s157_s1, 1024, %s297_s2, [#allocation4], %s258_s12, %s258_s12, %s259_s13  }
  0x3b   :  { %255 = dma.done.wait [#allocation4], 1024  }
  0x3c   :  { %256 = vsyncadd [#allocation4], 4294966272 }
  0x3d   :  { %166 = vsyncpa [#allocation3], 1 }
  0x3e   :  { %167 = vsyncpa [#allocation6], 1 }
  0x3f   :  { %168 = vsyncpa [#allocation4], 1 }

</bundles_post_ra>
